<compile_context>
chip_gen: v7x
topology: tpu7x:2x2x1
jax: 0.10.0
libtpu: 0.0.40
codegen_flags: <defaults>
</compile_context>

<pallas_src>
import math
from functools import partial

import jax
import jax.numpy as jnp
from jax.experimental import pallas as pl
from jax.experimental.pallas import tpu as pltpu


def _euclid_codebook_kernel(x_ref, e_ref, e2_ref, dist_ref, ind_ref, q_ref, *,
                            matmul_dtype):
    # x_ref  : (tN, d)  f32  -- one tile of flattened inputs
    # e_ref  : (C,  d)  f32  -- full codebook for this codebook index
    # e2_ref : (1,  C)  f32  -- precomputed ||e||^2 (hoisted out of the tile loop)
    x = x_ref[...]
    e = e_ref[...]
    e2 = e2_ref[...]
    tN, d = x.shape
    C = e.shape[0]

    # ||x||^2 per row  -> (tN, 1), always f32
    x2 = jnp.sum(x * x, axis=-1, keepdims=True)

    # x @ e^T on the MXU -> (tN, C); optionally bf16 inputs, f32 accumulation
    xy = jax.lax.dot_general(
        x.astype(matmul_dtype), e.astype(matmul_dtype),
        dimension_numbers=(((1,), (1,)), ((), ())),
        preferred_element_type=jnp.float32,
    )

    # dist = -sqrt(clamp(||x||^2 + ||e||^2 - 2 x.e, 0))
    d2 = jnp.maximum(x2 + e2 - 2.0 * xy, 0.0)
    dist = -jnp.sqrt(d2)
    dist_ref[...] = dist

    # argmax along the codebook axis with first-max tie-breaking (like torch.argmax).
    # NOTE: if a row is all-NaN, `dist == max_val` is false everywhere and the row
    # quantizes to zeros (differs from torch on NaN inputs); clean inputs unaffected.
    iota = jax.lax.broadcasted_iota(jnp.int32, (tN, C), 1)
    max_val = jnp.max(dist, axis=-1, keepdims=True)
    masked = jnp.where(dist == max_val, iota, jnp.int32(C))
    ind_col = jnp.min(masked, axis=-1, keepdims=True)          # (tN, 1)

    # Lane-dense index output: reduce in a (tN//128, 128, C) view so the stored
    # block is a full 128-wide slab (unmasked vector stores).
    ind_wide = jnp.min(masked.reshape(tN // 128, 128, C), axis=-1)   # (tN//128, 128)
    ind_ref[...] = ind_wide[None]

    # quantize = one_hot(ind) @ embed ; one-hot reuses `masked` (first max only).
    onehot = (masked == ind_col).astype(jnp.float32)             # (tN, C)
    q_ref[...] = jax.lax.dot_general(
        onehot, e,
        dimension_numbers=(((1,), (0,)), ((), ())),
        preferred_element_type=jnp.float32,
    )


def _round_up(x, m):
    return ((x + m - 1) // m) * m


def euclidean_codebook_forward(x, embed, *, tile_n=1024, matmul_dtype=jnp.float32):
    """Eval-mode forward of EuclideanCodebook.

    x     : (b, n, d) float  (needs_codebook_dim path, ndim < 4)
    embed : (h, C, d) float  (h = num_codebooks, must be 1 here)
    returns (quantize (b,n,d) f32, embed_ind (b,n) int32, dist (h,b,n,C) f32)
    """
    b, n, d = x.shape
    h, C, de = embed.shape
    assert de == d
    if h != 1:
        raise NotImplementedError("wrapper handles num_codebooks == 1")
    x = x.astype(jnp.float32)
    embed = embed.astype(jnp.float32)

    N = b * n
    # Row tile: multiple of 128 (lane-dense index slabs), capped by tile_n;
    # pad the row count instead of collapsing to a single huge block.
    tN = min(_round_up(tile_n, 128), _round_up(N, 128))
    num_tiles = pl.cdiv(N, tN)
    N_pad = num_tiles * tN

    flatten = x.reshape(h, N, d)
    if N_pad != N:
        flatten = jnp.pad(flatten, ((0, 0), (0, N_pad - N), (0, 0)))

    # Hoist ||e||^2 out of the per-tile loop (codebook constant across tiles).
    e2 = jnp.sum(embed * embed, axis=-1)[:, None, :]              # (h, 1, C)

    grid = (h, num_tiles)

    # VMEM budget: double-buffered IO tiles + headroom for in-kernel temporaries.
    io_bytes = 2 * 4 * (tN * d + C * d + C + tN * C + tN + tN * d)
    vmem_limit = int(min(max(2 * io_bytes, 32 * 1024 * 1024), 100 * 1024 * 1024))

    flops = 2 * 2 * h * N_pad * C * d          # distance matmul + one-hot gather
    bytes_accessed = 4 * h * (N_pad * d + C * d + C + N_pad * C + N_pad + N_pad * d)

    dist, ind, quant = pl.pallas_call(
        partial(_euclid_codebook_kernel, matmul_dtype=matmul_dtype),
        out_shape=(
            jax.ShapeDtypeStruct((h, N_pad, C), jnp.float32),
            jax.ShapeDtypeStruct((h, num_tiles, tN // 128, 128), jnp.int32),
            jax.ShapeDtypeStruct((h, N_pad, d), jnp.float32),
        ),
        grid_spec=pltpu.PrefetchScalarGridSpec(
            num_scalar_prefetch=0,
            grid=grid,
            in_specs=[
                pl.BlockSpec((None, tN, d), lambda c, i: (c, i, 0)),
                # codebook: block index constant across the i axis
                pl.BlockSpec((None, C, d), lambda c, i: (c, 0, 0)),
                pl.BlockSpec((None, 1, C), lambda c, i: (c, 0, 0)),
            ],
            out_specs=[
                pl.BlockSpec((None, tN, C), lambda c, i: (c, i, 0)),
                pl.BlockSpec((None, 1, tN // 128, 128), lambda c, i: (c, i, 0, 0)),
                pl.BlockSpec((None, tN, d), lambda c, i: (c, i, 0)),
            ],
        ),
        compiler_params=pltpu.CompilerParams(
            dimension_semantics=("parallel", "parallel"),
            vmem_limit_bytes=vmem_limit,
        ),
        cost_estimate=pl.CostEstimate(
            flops=int(flops),
            transcendentals=int(h * N_pad * C),
            bytes_accessed=int(bytes_accessed),
        ),
    )(flatten, embed, e2)

    quantize = quant[:, :N].reshape(h, b, n, d)[0]     # squeeze codebook dim
    embed_ind = ind.reshape(h, N_pad)[:, :N].reshape(h, b, n)[0]
    dist = dist[:, :N].reshape(h, b, n, C)             # dist keeps the codebook dim
    return quantize, embed_ind, dist


def _reference_forward(x, embed):
    # pure-JAX reference for correctness checking
    b, n, d = x.shape
    h, C, _ = embed.shape
    flatten = x.astype(jnp.float32).reshape(h, b * n, d)
    e = embed.astype(jnp.float32)
    x2 = jnp.sum(flatten ** 2, axis=-1)[..., :, None]
    y2 = jnp.sum(e ** 2, axis=-1)[..., None, :]
    xy = jnp.einsum("hid,hjd->hij", flatten, e) * -2.0
    dist = -jnp.sqrt(jnp.clip(x2 + y2 + xy, 0.0, None))
    ind = jnp.argmax(dist, axis=-1)                    # (h, N)
    quant = e[0][ind[0]]                               # (N, d)
    return (quant.reshape(b, n, d),
            ind.reshape(h, b, n)[0].astype(jnp.int32),
            dist.reshape(h, b, n, C))


if __name__ == "__main__":
    num_codebooks = 1
    codebook_size = 128
    dim = 32

    key = jax.random.PRNGKey(0)
    k_x1, k_x2, k_e = jax.random.split(key, 3)

    # uniform_init ~ kaiming_uniform_ on (num_codebooks, codebook_size, dim)
    fan_in = codebook_size * dim
    bound = math.sqrt(6.0 / fan_in)
    embed = jax.random.uniform(
        k_e, (num_codebooks, codebook_size, dim), jnp.float32, -bound, bound
    )

    # Case 1: small shape, single tile, exact f32 path
    b1, n1 = 2, 64
    x1 = jax.random.normal(k_x1, (b1, n1, dim), jnp.float32)
    q1, i1, d1 = jax.block_until_ready(euclidean_codebook_forward(x1, embed))
    qr, ir, dr = _reference_forward(x1, embed)
    assert q1.shape == (b1, n1, dim)
    assert i1.shape == (b1, n1)
    assert d1.shape == (num_codebooks, b1, n1, codebook_size)
    assert jnp.allclose(d1, dr, atol=1e-4, rtol=1e-4)
    assert jnp.array_equal(i1, ir)
    assert jnp.allclose(q1, qr, atol=1e-5, rtol=1e-5)

    # Case 2: multi-tile grid with row padding (N=300, tile=256 -> 2 tiles, trimmed)
    b2, n2 = 3, 100
    x2 = jax.random.normal(k_x2, (b2, n2, dim), jnp.float32)
    q2, i2, d2 = jax.block_until_ready(
        euclidean_codebook_forward(x2, embed, tile_n=256))
    qr2, ir2, dr2 = _reference_forward(x2, embed)
    assert jnp.allclose(d2, dr2, atol=1e-4, rtol=1e-4)
    assert jnp.array_equal(i2, ir2)
    assert jnp.allclose(q2, qr2, atol=1e-5, rtol=1e-5)

    # Case 3: bf16 distance matmul (MXU-native on v6e/v7x); dist drifts ~1e-2 relative.
    q3, i3, d3 = jax.block_until_ready(
        euclidean_codebook_forward(x1, embed, matmul_dtype=jnp.bfloat16))
    assert jnp.allclose(d3, dr, atol=2e-2, rtol=2e-2)
    assert jnp.mean((i3 == ir).astype(jnp.float32)) > 0.9

    print("KERNEL_OK")
</pallas_src>

<mosaic_0001>
module attributes {stable_mosaic.version = 11 : i64} {
  func.func @_euclid_codebook_kernel(%arg0: i32, %arg1: i32, %arg2: memref<1x128x32xf32, #tpu.memory_space<vmem>>, %arg3: memref<1x128x32xf32, #tpu.memory_space<vmem>>, %arg4: memref<1x1x128xf32, #tpu.memory_space<vmem>>, %arg5: memref<1x128x128xf32, #tpu.memory_space<vmem>>, %arg6: memref<1x1x1x128xi32, #tpu.memory_space<vmem>>, %arg7: memref<1x128x32xf32, #tpu.memory_space<vmem>>) attributes {dimension_semantics = [#tpu.dimension_semantics<parallel>, #tpu.dimension_semantics<parallel>], iteration_bounds = array<i64: 1, 1>, scalar_prefetch = 0 : i64, scratch_operands = 0 : i64, tpu.core_type = #tpu.core_type<tc>, window_params = [{transform_indices = @transform_0, window_bounds = array<i64: 1, 128, 32>}, {transform_indices = @transform_1, window_bounds = array<i64: 1, 128, 32>}, {transform_indices = @transform_2, window_bounds = array<i64: 1, 1, 128>}, {transform_indices = @transform_3, window_bounds = array<i64: 1, 128, 128>}, {transform_indices = @transform_4, window_bounds = array<i64: 1, 1, 1, 128>}, {transform_indices = @transform_5, window_bounds = array<i64: 1, 128, 32>}]} {
    %c0 = arith.constant 0 : index
    %c0_0 = arith.constant 0 : index
    %c0_1 = arith.constant 0 : index
    %0 = vector.load %arg2[%c0, %c0_0, %c0_1] : memref<1x128x32xf32, #tpu.memory_space<vmem>>, vector<1x128x32xf32>
    %1 = vector.shape_cast %0 : vector<1x128x32xf32> to vector<128x32xf32>
    %c0_2 = arith.constant 0 : index
    %c0_3 = arith.constant 0 : index
    %c0_4 = arith.constant 0 : index
    %2 = vector.load %arg3[%c0_2, %c0_3, %c0_4] : memref<1x128x32xf32, #tpu.memory_space<vmem>>, vector<1x128x32xf32>
    %3 = vector.shape_cast %2 : vector<1x128x32xf32> to vector<128x32xf32>
    %c0_5 = arith.constant 0 : index
    %c0_6 = arith.constant 0 : index
    %c0_7 = arith.constant 0 : index
    %4 = vector.load %arg4[%c0_5, %c0_6, %c0_7] : memref<1x1x128xf32, #tpu.memory_space<vmem>>, vector<1x1x128xf32>
    %5 = vector.shape_cast %4 : vector<1x1x128xf32> to vector<1x128xf32>
    %6 = arith.mulf %1, %1 : vector<128x32xf32>
    %cst = arith.constant dense<0.000000e+00> : vector<128xf32>
    %7 = vector.multi_reduction <add>, %6, %cst [1] : vector<128x32xf32> to vector<128xf32>
    %8 = vector.shape_cast %7 : vector<128xf32> to vector<128x1xf32>
    %cst_8 = arith.constant dense<0.000000e+00> : vector<128x128xf32>
    %9 = tpu.matmul %1, %3, %cst_8 {dimension_numbers = #tpu.dot_dimension_numbers<[1], [1], [0], [0], [0, 0, 1, 0], [], []>} : vector<128x32xf32>, vector<128x32xf32>, vector<128x128xf32> -> vector<128x128xf32>
    %10 = vector.broadcast %8 : vector<128x1xf32> to vector<128x128xf32>
    %11 = vector.broadcast %5 : vector<1x128xf32> to vector<128x128xf32>
    %12 = arith.addf %10, %11 : vector<128x128xf32>
    %cst_9 = arith.constant 2.000000e+00 : f32
    %13 = vector.broadcast %cst_9 : f32 to vector<128x128xf32>
    %14 = arith.mulf %13, %9 : vector<128x128xf32>
    %15 = arith.subf %12, %14 : vector<128x128xf32>
    %cst_10 = arith.constant 0.000000e+00 : f32
    %16 = vector.broadcast %cst_10 : f32 to vector<128x128xf32>
    %17 = arith.maximumf %15, %16 : vector<128x128xf32>
    %18 = math.sqrt %17 : vector<128x128xf32>
    %cst_11 = arith.constant 0.000000e+00 : f32
    %19 = vector.broadcast %cst_11 : f32 to vector<128x128xf32>
    %20 = arith.subf %19, %18 : vector<128x128xf32>
    %c0_12 = arith.constant 0 : index
    %c0_13 = arith.constant 0 : index
    %c0_14 = arith.constant 0 : index
    %21 = vector.load %arg5[%c0_12, %c0_13, %c0_14] : memref<1x128x128xf32, #tpu.memory_space<vmem>>, vector<1x128x128xf32>
    %22 = vector.shape_cast %21 : vector<1x128x128xf32> to vector<128x128xf32>
    %23 = vector.shape_cast %20 : vector<128x128xf32> to vector<1x128x128xf32>
    tpu.vector_store %arg5[%c0_12, %c0_13, %c0_14], %23 {strides = array<i32>} : memref<1x128x128xf32, #tpu.memory_space<vmem>>, vector<1x128x128xf32>,
    %24 = tpu.iota {dimensions = array<i32: 1>} : vector<128x128xi32>
    %cst_15 = arith.constant dense<0xFF800000> : vector<128xf32>
    %25 = vector.multi_reduction <maximumf>, %20, %cst_15 [1] : vector<128x128xf32> to vector<128xf32>
    %26 = vector.shape_cast %25 : vector<128xf32> to vector<128x1xf32>
    %27 = vector.broadcast %26 : vector<128x1xf32> to vector<128x128xf32>
    %28 = arith.cmpf oeq, %20, %27 : vector<128x128xf32>
    %c128_i32 = arith.constant 128 : i32
    %29 = vector.broadcast %c128_i32 : i32 to vector<128x128xi32>
    %30 = arith.select %28, %24, %29 : vector<128x128xi1>, vector<128x128xi32>
    %cst_16 = arith.constant dense<2147483647> : vector<128xi32>
    %31 = vector.multi_reduction <minsi>, %30, %cst_16 [1] : vector<128x128xi32> to vector<128xi32>
    %32 = vector.shape_cast %31 : vector<128xi32> to vector<128x1xi32>
    %33 = vector.shape_cast %30 : vector<128x128xi32> to vector<1x128x128xi32>
    %cst_17 = arith.constant dense<2147483647> : vector<1x128xi32>
    %34 = vector.multi_reduction <minsi>, %33, %cst_17 [2] : vector<1x128x128xi32> to vector<1x128xi32>
    %35 = vector.shape_cast %34 : vector<1x128xi32> to vector<1x1x128xi32>
    %c0_18 = arith.constant 0 : index
    %c0_19 = arith.constant 0 : index
    %c0_20 = arith.constant 0 : index
    %c0_21 = arith.constant 0 : index
    %36 = vector.load %arg6[%c0_18, %c0_19, %c0_20, %c0_21] : memref<1x1x1x128xi32, #tpu.memory_space<vmem>>, vector<1x1x1x128xi32>
    %37 = vector.shape_cast %36 : vector<1x1x1x128xi32> to vector<1x1x128xi32>
    %38 = vector.shape_cast %35 : vector<1x1x128xi32> to vector<1x1x1x128xi32>
    tpu.vector_store %arg6[%c0_18, %c0_19, %c0_20, %c0_21], %38 {strides = array<i32>} : memref<1x1x1x128xi32, #tpu.memory_space<vmem>>, vector<1x1x1x128xi32>,
    %39 = vector.broadcast %32 : vector<128x1xi32> to vector<128x128xi32>
    %40 = arith.cmpi eq, %30, %39 : vector<128x128xi32>
    %41 = arith.extui %40 : vector<128x128xi1> to vector<128x128xi32>
    %42 = arith.sitofp %41 : vector<128x128xi32> to vector<128x128xf32>
    %cst_22 = arith.constant dense<0.000000e+00> : vector<128x32xf32>
    %43 = tpu.matmul %42, %3, %cst_22 {dimension_numbers = #tpu.dot_dimension_numbers<[1], [0], [0], [1], [0, 0, 1, 1], [], []>} : vector<128x128xf32>, vector<128x32xf32>, vector<128x32xf32> -> vector<128x32xf32>
    %c0_23 = arith.constant 0 : index
    %c0_24 = arith.constant 0 : index
    %c0_25 = arith.constant 0 : index
    %44 = vector.load %arg7[%c0_23, %c0_24, %c0_25] : memref<1x128x32xf32, #tpu.memory_space<vmem>>, vector<1x128x32xf32>
    %45 = vector.shape_cast %44 : vector<1x128x32xf32> to vector<128x32xf32>
    %46 = vector.shape_cast %43 : vector<128x32xf32> to vector<1x128x32xf32>
    tpu.vector_store %arg7[%c0_23, %c0_24, %c0_25], %46 {strides = array<i32>} : memref<1x128x32xf32, #tpu.memory_space<vmem>>, vector<1x128x32xf32>,
    return
  }
  func.func @transform_0(%arg0: i32, %arg1: i32) -> (i32, i32, i32) {
    %c0_i32 = arith.constant 0 : i32
    %c0_i32_0 = arith.constant 0 : i32
    return %arg0, %arg1, %c0_i32 : i32, i32, i32
  }
  func.func @transform_1(%arg0: i32, %arg1: i32) -> (i32, i32, i32) {
    %c0_i32 = arith.constant 0 : i32
    %c0_i32_0 = arith.constant 0 : i32
    %c0_i32_1 = arith.constant 0 : i32
    return %arg0, %c0_i32, %c0_i32_0 : i32, i32, i32
  }
  func.func @transform_2(%arg0: i32, %arg1: i32) -> (i32, i32, i32) {
    %c0_i32 = arith.constant 0 : i32
    %c0_i32_0 = arith.constant 0 : i32
    %c0_i32_1 = arith.constant 0 : i32
    return %arg0, %c0_i32, %c0_i32_0 : i32, i32, i32
  }
  func.func @transform_3(%arg0: i32, %arg1: i32) -> (i32, i32, i32) {
    %c0_i32 = arith.constant 0 : i32
    %c0_i32_0 = arith.constant 0 : i32
    return %arg0, %arg1, %c0_i32 : i32, i32, i32
  }
  func.func @transform_4(%arg0: i32, %arg1: i32) -> (i32, i32, i32, i32) {
    %c0_i32 = arith.constant 0 : i32
    %c0_i32_0 = arith.constant 0 : i32
    %c0_i32_1 = arith.constant 0 : i32
    return %arg0, %arg1, %c0_i32, %c0_i32_0 : i32, i32, i32, i32
  }
  func.func @transform_5(%arg0: i32, %arg1: i32) -> (i32, i32, i32) {
    %c0_i32 = arith.constant 0 : i32
    %c0_i32_0 = arith.constant 0 : i32
    return %arg0, %arg1, %c0_i32 : i32, i32, i32
  }
}

</mosaic_0001>

<bundles_post_ra>
// kernel: tpu_custom_call.1
= control target key start
LH: loop header
LB: loop body
LE: loop exit
PB: predicated region body
PF: predicated region fallthrough
CT: control target
= control target key end

     0   :  { %11 = vsyncpa [#allocation3], 0  ;;  %vm68_vm0 = vcmask 261120   ;;  %s2534_s0 = inlined_call_operand.vmem [shape: f32[1,128,32], index: 0, kind: input, shape index: {}]   ;;  %s2535_s1 = inlined_call_operand.vmem [shape: f32[1,128,32], index: 1, kind: input, shape index: {}]   ;;  %s2536_s2 = inlined_call_operand.vmem [shape: f32[1,1,128], index: 2, kind: input, shape index: {}]   ;;  %s2537_s3 = inlined_call_operand.hbm [shape: f32[1,128,128], index: 3, kind: output, shape index: {0}]   ;;  %s2538_s4 = inlined_call_operand.hbm [shape: s32[1,1,1,128], index: 4, kind: output, shape index: {1}]   ;;  %s2539_s5 = inlined_call_operand.vmem [shape: f32[1,128,32], index: 5, kind: output, shape index: {2}]  }
   0x1   :  { %v35_v0 = vld [vmem:[%s2535_s1] sm:$0xff]  ;;  %v36_v1 = vld [vmem:[%s2535_s1 + $0x8] sm:$0xff]  ;;  %v37_v2 = vld [vmem:[%s2535_s1 + $0x10] sm:$0xff] }
   0x2   :  { %v1456_v3 = vpack.c.bf16 %v36_v1, %v35_v0  ;;  %vm1667_vm1 = vmpackc.low %vm68_vm0, %vm68_vm0  ;;  %v38_v5 = vld [vmem:[%s2535_s1 + $0x18] sm:$0xff]  ;;  %v39_v7 = vld [vmem:[%s2535_s1 + $0x20] sm:$0xff] }
   0x3   :  { %v1462_v6 = vpack.c.bf16 %v38_v5, %v37_v2  ;;  %v40_v8 = vld [vmem:[%s2535_s1 + $0x28] sm:$0xff]  ;;  %v19_v9 = vld [vmem:[%s2534_s0] sm:$0xff]  ;;  %v1698_v12 = vld [vmem:[%s2534_s0 + $0x10] sm:$0xff] }
   0x4   :  { %1458 = vmatprep.subr.msk.bf16.mxu0 %vm1667_vm1, %v1456_v3  ;;  %1505 = vmatprep.subr.bf16.mxu1 %v1456_v3  ;;  %v52_v10 = vmul.f32 %v19_v9, %v19_v9  ;;  %v1693_v11 = vld [vmem:[%s2534_s0 + $0x8] sm:$0xff]  ;;  %v1703_v13 = vld [vmem:[%s2534_s0 + $0x18] sm:$0xff]  ;;  %v1468_v14 = vpack.c.bf16 %v40_v8, %v39_v7  ;;  %v54_v15 = vmul.f32 %v1698_v12, %v1698_v12  ;;  %v41_v19 = vld [vmem:[%s2535_s1 + $0x30] sm:$0xff] }
   0x5   :  { %1461 = vmatpush3.bf16.xpose.msk.msra.mxu0 %vm1667_vm1, %v1456_v3  ;;  %1507 = vmatpush3.bf16.msra.mxu1 %v1456_v3  ;;  %v53_v16 = vmul.f32 %v1693_v11, %v1693_v11  ;;  %v55_v17 = vmul.f32 %v1703_v13, %v1703_v13  ;;  %v42_v20 = vld [vmem:[%s2535_s1 + $0x38] sm:$0xff]  ;;  %v1721_v21 = vld [vmem:[%s2534_s0 + $0x20] sm:$0xff]  ;;  %v1727_v23 = vld [vmem:[%s2534_s0 + $0x28] sm:$0xff] }
   0x6   :  { %1464 = vmatprep.subr.msk.bf16.mxu0 %vm1667_vm1, %v1462_v6  ;;  %1509 = vmatprep.subr.bf16.mxu1 %v1462_v6  ;;  %v69_v18 = vsel %vm68_vm0, %v52_v10, 0.0  ;;  %v75_v22 = vsel %vm68_vm0, %v54_v15, 0.0  ;;  %v56_v25 = vmul.f32 %v1721_v21, %v1721_v21  ;;  %v57_v27 = vmul.f32 %v1727_v23, %v1727_v23 }
   0x7   :  { %1376 = vmatprep.mubr.msk.f32.mxu0 %vm68_vm0, %v19_v9  ;;  %70 = vadd.xlane.f32.xlu0 %v69_v18  ;;  %v72_v24 = vsel %vm68_vm0, %v53_v16, 0.0  ;;  %v78_v26 = vsel %vm68_vm0, %v55_v17, 0.0 }
   0x8   :  { %76 = vadd.xlane.f32.xlu1 %v75_v22 }
   0x9   :  { %1511 = vmatpush3.bf16.msra.mxu1 %v1462_v6 }
   0xa   :  { %1513 = vmatprep.subr.bf16.mxu1 %v1468_v14 }
   0xb   :  { %12 = vsyncpa [#allocation5], 0  ;;  %v1474_v28 = vpack.c.bf16 %v42_v20, %v41_v19  ;;  %v43_v29 = vld [vmem:[%s2535_s1 + $0x40] sm:$0xff]  ;;  %v44_v30 = vld [vmem:[%s2535_s1 + $0x48] sm:$0xff]  ;;  %73 = vadd.xlane.f32.xlu0 %v72_v24  ;;  %v81_v33 = vsel %vm68_vm0, %v56_v25, 0.0  ;;  %v84_v36 = vsel %vm68_vm0, %v57_v27, 0.0 }
   0xc   :  { %v1748_v31 = vld [vmem:[%s2534_s0 + $0x30] sm:$0xff]  ;;  %v1753_v32 = vld [vmem:[%s2534_s0 + $0x38] sm:$0xff]  ;;  %79 = vadd.xlane.f32.xlu1 %v78_v26  ;;  %v1480_v35 = vpack.c.bf16 %v44_v30, %v43_v29  ;;  %v1770_v40 = vld [vmem:[%s2534_s0 + $0x40] sm:$0xff] }
   0xd   :  { %1467 = vmatpush3.bf16.xpose.msk.msra.mxu0 %vm1667_vm1, %v1462_v6  ;;  %1515 = vmatpush3.bf16.msra.mxu1 %v1468_v14  ;;  %v58_v34 = vmul.f32 %v1748_v31, %v1748_v31  ;;  %v59_v37 = vmul.f32 %v1753_v32, %v1753_v32  ;;  %v45_v38 = vld [vmem:[%s2535_s1 + $0x50] sm:$0xff]  ;;  %v46_v39 = vld [vmem:[%s2535_s1 + $0x58] sm:$0xff]  ;;  %v1775_v41 = vld [vmem:[%s2534_s0 + $0x48] sm:$0xff]  ;;  %v60_v43 = vmul.f32 %v1770_v40, %v1770_v40 }
   0xe   :  { %1470 = vmatprep.subr.msk.bf16.mxu0 %vm1667_vm1, %v1468_v14  ;;  %1517 = vmatprep.subr.bf16.mxu1 %v1474_v28  ;;  %v61_v45 = vmul.f32 %v1775_v41, %v1775_v41  ;;  %v1486_v46 = vpack.c.bf16 %v46_v39, %v45_v38  ;;  %v47_v47 = vld [vmem:[%s2535_s1 + $0x60] sm:$0xff]  ;;  %v48_v48 = vld [vmem:[%s2535_s1 + $0x68] sm:$0xff]  ;;  %v29_v49 = vld [vmem:[%s2534_s0 + $0x50] sm:$0xff] }
   0xf   :  { %82 = vadd.xlane.f32.xlu0 %v81_v33  ;;  %v87_v42 = vsel %vm68_vm0, %v58_v34, 0.0  ;;  %v90_v44 = vsel %vm68_vm0, %v59_v37, 0.0  ;;  %v30_v50 = vld [vmem:[%s2534_s0 + $0x58] sm:$0xff]  ;;  %v93_v51 = vsel %vm68_vm0, %v60_v43, 0.0  ;;  %v62_v52 = vmul.f32 %v29_v49, %v29_v49  ;;  %v49_v56 = vld [vmem:[%s2535_s1 + $0x70] sm:$0xff]  ;;  %v31_v58 = vld [vmem:[%s2534_s0 + $0x60] sm:$0xff] }
  0x10   :  { %85 = vadd.xlane.f32.xlu1 %v84_v36  ;;  %v1492_v53 = vpack.c.bf16 %v48_v48, %v47_v47  ;;  %v96_v54 = vsel %vm68_vm0, %v61_v45, 0.0  ;;  %v63_v55 = vmul.f32 %v30_v50, %v30_v50  ;;  %v50_v57 = vld [vmem:[%s2535_s1 + $0x78] sm:$0xff]  ;;  %v32_v59 = vld [vmem:[%s2534_s0 + $0x68] sm:$0xff]  ;;  %v64_v61 = vmul.f32 %v31_v58, %v31_v58  ;;  %v33_v1 = vld [vmem:[%s2534_s0 + $0x70] sm:$0xff] }
  0x11   :  { %1519 = vmatpush3.bf16.msra.mxu1 %v1474_v28  ;;  %v99_v60 = vsel %vm68_vm0, %v62_v52, 0.0  ;;  %v65_v63 = vmul.f32 %v32_v59, %v32_v59  ;;  %v1498_v0 = vpack.c.bf16 %v50_v57, %v49_v56  ;;  %v34_v2 = vld [vmem:[%s2534_s0 + $0x78] sm:$0xff]  ;;  %v66_v5 = vmul.f32 %v33_v1, %v33_v1  ;;  %v1247_v20 = vld [vmem:[%s2536_s2] ss:$0 sm:$0xff]  ;;  %s1622_s2 = smov [#allocation2]  }
  0x12   :  { %1521 = vmatprep.subr.bf16.mxu1 %v1480_v35  ;;  %v102_v62 = vsel %vm68_vm0, %v63_v55, 0.0  ;;  %v105_v3 = vsel %vm68_vm0, %v64_v61, 0.0  ;;  %v67_v7 = vmul.f32 %v34_v2, %v34_v2  ;;  %s1186_s7 = sshll.u32 %s1622_s2, 4  ;;  %s1187_s7 = int_to_ptr.vmem [resolvable:$true] %s1186_s7 }
  0x13   :  { %88 = vadd.xlane.f32.xlu0 %v87_v42  ;;  %v108_v6 = vsel %vm68_vm0, %v65_v63, 0.0  ;;  %v111_v8 = vsel %vm68_vm0, %v66_v5, 0.0  ;;  %s1573_s8 = scalar_lea.vmem %s1187_s7, 2048  ;;  %p1578_p1 = scmp.lt.s32.totalorder %s1187_s7, %s1187_s7 }
  0x14   :  { %91 = vadd.xlane.f32.xlu1 %v90_v44  ;;  %v114_v9 = vsel %vm68_vm0, %v67_v7, 0.0  ;;  %p1574_p0 = scmp.ne.s32.totalorder %s1187_s7, %s1573_s8  ;;  %p1579_p2 = scmp.lt.s32.totalorder %s1573_s8, %s1573_s8 }
  0x15   :  { %1473 = vmatpush3.bf16.xpose.msk.msra.mxu0 %vm1667_vm1, %v1468_v14  ;;  %1523 = vmatpush3.bf16.msra.mxu1 %v1480_v35 }
  0x16   :  { %1476 = vmatprep.subr.msk.bf16.mxu0 %vm1667_vm1, %v1474_v28  ;;  %1525 = vmatprep.subr.bf16.mxu1 %v1486_v46  ;;  %p1580_p3 = por %p1579_p2, %p1578_p1 }
  0x17   :  { %94 = vadd.xlane.f32.xlu0 %v93_v51 }
  0x18   :  { %97 = vadd.xlane.f32.xlu1 %v96_v54  ;;  %p1581_p4 = pnand %p1580_p3, %p1574_p0 }
  0x19   :  { %1527 = vmatpush3.bf16.msra.mxu1 %v1486_v46 }
  0x1a   :  { %1529 = vmatprep.subr.bf16.mxu1 %v1492_v53 }
  0x1b   :  { %100 = vadd.xlane.f32.xlu0 %v99_v60 }
  0x1c   :  { %103 = vadd.xlane.f32.xlu1 %v102_v62 }
  0x1d   :  { %1479 = vmatpush3.bf16.xpose.msk.msra.mxu0 %vm1667_vm1, %v1474_v28  ;;  %1531 = vmatpush3.bf16.msra.mxu1 %v1492_v53 }
  0x1e   :  { %1482 = vmatprep.subr.msk.bf16.mxu0 %vm1667_vm1, %v1480_v35  ;;  %1533 = vmatprep.subr.bf16.mxu1 %v1498_v0 }
  0x1f   :  { %106 = vadd.xlane.f32.xlu0 %v105_v3 }
  0x20   :  { %109 = vadd.xlane.f32.xlu1 %v108_v6 }
  0x21   :  { %1535 = vmatpush3.bf16.msra.mxu1 %v1498_v0 }
  0x23   :  { %112 = vadd.xlane.f32.xlu0 %v111_v8 }
  0x24   :  { %115 = vadd.xlane.f32.xlu1 %v114_v9 }
  0x25   :  { %1485 = vmatpush3.bf16.xpose.msk.msra.mxu0 %vm1667_vm1, %v1480_v35 }
  0x26   :  { %1488 = vmatprep.subr.msk.bf16.mxu0 %vm1667_vm1, %v1486_v46 }
  0x2d   :  { %1491 = vmatpush3.bf16.xpose.msk.msra.mxu0 %vm1667_vm1, %v1486_v46 }
  0x2e   :  { %1494 = vmatprep.subr.msk.bf16.mxu0 %vm1667_vm1, %v1492_v53 }
  0x35   :  { %1497 = vmatpush3.bf16.xpose.msk.msra.mxu0 %vm1667_vm1, %v1492_v53 }
  0x36   :  { %1500 = vmatprep.subr.msk.bf16.mxu0 %vm1667_vm1, %v1498_v0 }
  0x3d   :  { %1503 = vmatpush3.bf16.xpose.msk.msra.mxu0 %vm1667_vm1, %v1498_v0 }
  0x44   :  { %1377 = vmatmul.mubr.msk.f32.vlgmr.msra.gmra.mrb[0].mxu0 %vm68_vm0, %v1693_v11 }
  0x45   :  { %1379 = vmatprep.mubr.msk.f32.mxu0 %vm68_vm0, %v1698_v12 }
  0x48   :  { %1380 = vmatmul.mubr.msk.f32.gmra.mrb[2].mxu0 %vm68_vm0, %v1703_v13 }
  0x49   :  { %1382 = vmatprep.mubr.msk.f32.mxu0 %vm68_vm0, %v1721_v21 }
  0x4c   :  { %1383 = vmatmul.mubr.msk.f32.gmra.mrb[4].mxu0 %vm68_vm0, %v1727_v23 }
  0x4d   :  { %1385 = vmatprep.mubr.msk.f32.mxu0 %vm68_vm0, %v1748_v31 }
  0x50   :  { %1386 = vmatmul.mubr.msk.f32.gmra.mrb[6].mxu0 %vm68_vm0, %v1753_v32 }
  0x51   :  { %1388 = vmatprep.mubr.msk.f32.mxu0 %vm68_vm0, %v1770_v40 }
  0x54   :  { %1389 = vmatmul.mubr.msk.f32.gmra.mrb[8].mxu0 %vm68_vm0, %v1775_v41 }
  0x55   :  { %1391 = vmatprep.mubr.msk.f32.mxu0 %vm68_vm0, %v29_v49 }
  0x58   :  { %1392 = vmatmul.mubr.msk.f32.gmra.mrb[10].mxu0 %vm68_vm0, %v30_v50 }
  0x59   :  { %1394 = vmatprep.mubr.msk.f32.mxu0 %vm68_vm0, %v31_v58 }
  0x5c   :  { %1395 = vmatmul.mubr.msk.f32.gmra.mrb[12].mxu0 %vm68_vm0, %v32_v59 }
  0x5d   :  { %1397 = vmatprep.mubr.msk.f32.mxu0 %vm68_vm0, %v33_v1 }
  0x60   :  { %1398 = vmatmul.mubr.msk.f32.gmra.mrb[14].mxu0 %vm68_vm0, %v34_v2 }
  0x94   :  { %v71_v10 = vpop.xlane.xlu0 %70 }
  0x95   :  { %v77_v4 = vpop.xlane.xlu1 %76  ;;  %v364_v26 = vadd.f32 %v1247_v20, %v71_v10 }
  0x96   :  { %v366_v37 = vadd.f32 %v1247_v20, %v77_v4 }
  0x98   :  { %v74_v12 = vpop.xlane.xlu0 %73 }
  0x99   :  { %v80_v11 = vpop.xlane.xlu1 %79  ;;  %v365_v22 = vadd.f32 %v1247_v20, %v74_v12 }
  0x9a   :  { %v367_v29 = vadd.f32 %v1247_v20, %v80_v11 }
  0x9c   :  { %v83_v14 = vpop.xlane.xlu0 %82 }
  0x9d   :  { %v86_v13 = vpop.xlane.xlu1 %85  ;;  %v368_v44 = vadd.f32 %v1247_v20, %v83_v14 }
  0x9e   :  { %v369_v41 = vadd.f32 %v1247_v20, %v86_v13 }
  0xa0   :  { %v89_v16 = vpop.xlane.xlu0 %88 }
  0xa1   :  { %v92_v15 = vpop.xlane.xlu1 %91  ;;  %v370_v49 = vadd.f32 %v1247_v20, %v89_v16 }
  0xa2   :  { %v371_v45 = vadd.f32 %v1247_v20, %v92_v15 }
  0xa4   :  { %v95_v18 = vpop.xlane.xlu0 %94 }
  0xa5   :  { %v98_v17 = vpop.xlane.xlu1 %97  ;;  %v372_v54 = vadd.f32 %v1247_v20, %v95_v18 }
  0xa6   :  { %v373_v50 = vadd.f32 %v1247_v20, %v98_v17 }
  0xa8   :  { %v101_v21 = vpop.xlane.xlu0 %100 }
  0xa9   :  { %v104_v19 = vpop.xlane.xlu1 %103  ;;  %v1883_v58 = vadd.f32 %v1247_v20, %v101_v21 }
  0xaa   :  { %v1880_v55 = vadd.f32 %v1247_v20, %v104_v19 }
  0xac   :  { %v107_v33 = vpop.xlane.xlu0 %106 }
  0xad   :  { %v110_v30 = vpop.xlane.xlu1 %109  ;;  %v1888_v62 = vadd.f32 %v1247_v20, %v107_v33 }
  0xae   :  { %v1885_v59 = vadd.f32 %v1247_v20, %v110_v30 }
  0xb0   :  { %v113_v56 = vpop.xlane.xlu0 %112 }
  0xb1   :  { %v116_v51 = vpop.xlane.xlu1 %115  ;;  %v1895_v3 = vadd.f32 %v1247_v20, %v113_v56 }
  0xb2   :  { %v1890_v63 = vadd.f32 %v1247_v20, %v116_v51 }
 0x117   :  { %v1378_v23 = vpop.f32.mrb[0].mxu0 }
 0x118   :  { %v381_v24 = vmul.f32 2.0, %v1378_v23  ;;  %v279_v25 = vpop.f32.mrb[1].mxu0 }
 0x119   :  { %v380_v27 = vmul.f32 2.0, %v279_v25 }
 0x11a   :  { %v397_v28 = vsub.f32 %v365_v22, %v381_v24 }
 0x11b   :  { %v396_v31 = vsub.f32 %v364_v26, %v380_v27  ;;  %v1381_v32 = vpop.f32.mrb[2].mxu0 }
 0x11c   :  { %v1870_v34 = vmax.f32 %v397_v28, 0.0  ;;  %v383_v35 = vmul.f32 2.0, %v1381_v32  ;;  %v289_v36 = vpop.f32.mrb[3].mxu0 }
 0x11d   :  { %v1872_v38 = vmax.f32 %v396_v31, 0.0  ;;  %v382_v39 = vmul.f32 2.0, %v289_v36 }
 0x11e   :  { %1541 = vrsqrt.f32 %v1870_v34  ;;  %v399_v40 = vsub.f32 %v367_v29, %v383_v35  ;;  %vm437_vm2 = vcmp.eq.f32.partialorder %v1870_v34, inf  ;;  %vm439_vm3 = vcmp.eq.f32.partialorder %v1870_v34, 0.0 }
 0x11f   :  { %1543 = vrsqrt.f32 %v1872_v38  ;;  %v398_v42 = vsub.f32 %v366_v37, %v382_v39  ;;  %v1384_v43 = vpop.f32.mrb[4].mxu0  ;;  %v440_v7 = vand.u32 2147483648, %v1870_v34  ;;  %vm430_vm4 = vcmp.eq.f32.partialorder %v1872_v38, inf }
 0x120   :  { %v1876_v46 = vmax.f32 %v399_v40, 0.0  ;;  %v385_v47 = vmul.f32 2.0, %v1384_v43  ;;  %v299_v48 = vpop.f32.mrb[5].mxu0  ;;  %vm432_vm5 = vcmp.eq.f32.partialorder %v1872_v38, 0.0  ;;  %v433_v10 = vand.u32 2147483648, %v1872_v38 }
 0x121   :  { %v1878_v52 = vmax.f32 %v398_v42, 0.0  ;;  %v384_v53 = vmul.f32 2.0, %v299_v48 }
 0x122   :  { %1545 = vrsqrt.f32 %v1876_v46  ;;  %v401_v57 = vsub.f32 %v369_v41, %v385_v47  ;;  %vm451_vm6 = vcmp.eq.f32.partialorder %v1876_v46, inf  ;;  %vm453_vm7 = vcmp.eq.f32.partialorder %v1876_v46, 0.0 }
 0x123   :  { %1547 = vrsqrt.f32 %v1878_v52  ;;  %v400_v60 = vsub.f32 %v368_v44, %v384_v53  ;;  %v1387_v61 = vpop.f32.mrb[6].mxu0  ;;  %v454_v15 = vand.u32 2147483648, %v1876_v46  ;;  %vm444_vm8 = vcmp.eq.f32.partialorder %v1878_v52, inf }
 0x124   :  { %v1892_v0 = vmax.f32 %v401_v57, 0.0  ;;  %v387_v1 = vmul.f32 2.0, %v1387_v61  ;;  %v309_v2 = vpop.f32.mrb[7].mxu0  ;;  %vm446_vm9 = vcmp.eq.f32.partialorder %v1878_v52, 0.0  ;;  %v447_v20 = vand.u32 2147483648, %v1878_v52 }
 0x125   :  { %v1897_v5 = vmax.f32 %v400_v60, 0.0  ;;  %v386_v6 = vmul.f32 2.0, %v309_v2 }
 0x126   :  { %1549 = vrsqrt.f32 %v1892_v0  ;;  %v403_v8 = vsub.f32 %v371_v45, %v387_v1  ;;  %v468_v23 = vand.u32 2147483648, %v1892_v0  ;;  %vm465_vm10 = vcmp.eq.f32.partialorder %v1892_v0, inf }
 0x127   :  { %1551 = vrsqrt.f32 %v1897_v5  ;;  %v402_v9 = vsub.f32 %v370_v49, %v386_v6  ;;  %v1390_v4 = vpop.f32.mrb[8].mxu0  ;;  %v461_v27 = vand.u32 2147483648, %v1897_v5  ;;  %vm467_vm11 = vcmp.eq.f32.partialorder %v1892_v0, 0.0 }
 0x128   :  { %v1542_v11 = vpop.eup %1541  ;;  %v1907_v12 = vmax.f32 %v403_v8, 0.0  ;;  %v389_v13 = vmul.f32 2.0, %v1390_v4  ;;  %v319_v14 = vpop.f32.mrb[9].mxu0  ;;  %vm458_vm12 = vcmp.eq.f32.partialorder %v1897_v5, inf  ;;  %vm460_vm13 = vcmp.eq.f32.partialorder %v1897_v5, 0.0 }
 0x129   :  { %v1544_v16 = vpop.eup %1543  ;;  %v1912_v17 = vmax.f32 %v402_v9, 0.0  ;;  %v388_v18 = vmul.f32 2.0, %v319_v14  ;;  %v436_v19 = vmul.f32 %v1542_v11, %v1870_v34 }
 0x12a   :  { %1553 = vrsqrt.f32 %v1907_v12  ;;  %v405_v21 = vsub.f32 %v373_v50, %v389_v13  ;;  %v429_v22 = vmul.f32 %v1544_v16, %v1872_v38  ;;  %vm479_vm14 = vcmp.eq.f32.partialorder %v1907_v12, inf }
 0x12b   :  { %1555 = vrsqrt.f32 %v1912_v17  ;;  %v404_v24 = vsub.f32 %v372_v54, %v388_v18  ;;  %v1393_v25 = vpop.f32.mrb[10].mxu0  ;;  %v438_v26 = vsel %vm437_vm2, %v1870_v34, %v436_v19  ;;  %vm481_vm15 = vcmp.eq.f32.partialorder %v1907_v12, 0.0 }
 0x12c   :  { %v1546_v28 = vpop.eup %1545  ;;  %v1925_v29 = vmax.f32 %v405_v21, 0.0  ;;  %v391_v30 = vmul.f32 2.0, %v1393_v25  ;;  %v329_v31 = vpop.f32.mrb[11].mxu0  ;;  %v441_v32 = vsel %vm439_vm3, %v440_v7, %v438_v26  ;;  %v431_v33 = vsel %vm430_vm4, %v1872_v38, %v429_v22 }
 0x12d   :  { %v1548_v35 = vpop.eup %1547  ;;  %v1933_v36 = vmax.f32 %v404_v24, 0.0  ;;  %v390_v37 = vmul.f32 2.0, %v329_v31  ;;  %v1935_v39 = vsub.f32 0.0, %v441_v32  ;;  %v434_v40 = vsel %vm432_vm5, %v433_v10, %v431_v33 }
 0x12e   :  { %1557 = vrsqrt.f32 %v1925_v29  ;;  %v407_v34 = vsub.f32 %v1880_v55, %v391_v30  ;;  %v1943_v41 = vsub.f32 0.0, %v434_v40  ;;  %v450_v42 = vmul.f32 %v1546_v28, %v1876_v46 }
 0x12f   :  { %1559 = vrsqrt.f32 %v1933_v36  ;;  %v406_v43 = vsub.f32 %v1883_v58, %v390_v37  ;;  %v1396_v38 = vpop.f32.mrb[12].mxu0  ;;  %576 = vmax.xlane.f32.xlu1 %v1935_v39  ;;  %557 = vst [vmem:[#allocation2 + $0x8] sm:$0xff] %v1935_v39  ;;  %v443_v44 = vmul.f32 %v1548_v35, %v1878_v52  ;;  %v482_v51 = vand.u32 2147483648, %v1907_v12 }
 0x130   :  { %v1550_v45 = vpop.eup %1549  ;;  %v1953_v47 = vmax.f32 %v407_v34, 0.0  ;;  %v393_v48 = vmul.f32 2.0, %v1396_v38  ;;  %v339_v49 = vpop.f32.mrb[13].mxu0  ;;  %574 = vmax.xlane.f32.xlu0 %v1943_v41  ;;  %556 = vst [vmem:[#allocation2] sm:$0xff] %v1943_v41  ;;  %v452_v50 = vsel %vm451_vm6, %v1876_v46, %v450_v42  ;;  %vm472_vm1 = vcmp.eq.f32.partialorder %v1912_v17, inf }
 0x131   :  { %v1552_v53 = vpop.eup %1551  ;;  %v1962_v54 = vmax.f32 %v406_v43, 0.0  ;;  %v392_v55 = vmul.f32 2.0, %v339_v49  ;;  %v455_v56 = vsel %vm453_vm7, %v454_v15, %v452_v50  ;;  %v445_v57 = vsel %vm444_vm8, %v1878_v52, %v443_v44 }
 0x132   :  { %1561 = vrsqrt.f32 %v1953_v47  ;;  %v409_v58 = vsub.f32 %v1885_v59, %v393_v48  ;;  %v1972_v60 = vsub.f32 0.0, %v455_v56  ;;  %v448_v61 = vsel %vm446_vm9, %v447_v20, %v445_v57 }
 0x133   :  { %1563 = vrsqrt.f32 %v1962_v54  ;;  %v408_v46 = vsub.f32 %v1888_v62, %v392_v55  ;;  %v1399_v1 = vpop.f32.mrb[14].mxu0  ;;  %v1978_v2 = vsub.f32 0.0, %v448_v61  ;;  %v464_v6 = vmul.f32 %v1550_v45, %v1892_v0 }
 0x134   :  { %v1554_v7 = vpop.eup %1553  ;;  %v1981_v8 = vmax.f32 %v409_v58, 0.0  ;;  %v395_v9 = vmul.f32 2.0, %v1399_v1  ;;  %559 = vst [vmem:[#allocation2 + $0x18] sm:$0xff] %v1972_v60  ;;  %580 = vmax.xlane.f32.xlu1 %v1972_v60  ;;  %v349_v59 = vpop.f32.mrb[15].mxu0  ;;  %v457_v52 = vmul.f32 %v1552_v53, %v1897_v5  ;;  %vm474_vm2 = vcmp.eq.f32.partialorder %v1912_v17, 0.0 }
 0x135   :  { %v1556_v4 = vpop.eup %1555  ;;  %v1987_v62 = vmax.f32 %v408_v46, 0.0  ;;  %v394_v10 = vmul.f32 2.0, %v349_v59  ;;  %558 = vst [vmem:[#allocation2 + $0x10] sm:$0xff] %v1978_v2  ;;  %578 = vmax.xlane.f32.xlu0 %v1978_v2  ;;  %v466_v11 = vsel %vm465_vm10, %v1892_v0, %v464_v6  ;;  %v478_v13 = vmul.f32 %v1554_v7, %v1907_v12 }
 0x136   :  { %1565 = vrsqrt.f32 %v1981_v8  ;;  %v411_v14 = vsub.f32 %v1890_v63, %v395_v9  ;;  %v469_v15 = vsel %vm467_vm11, %v468_v23, %v466_v11  ;;  %v459_v16 = vsel %vm458_vm12, %v1897_v5, %v457_v52 }
 0x137   :  { %1567 = vrsqrt.f32 %v1987_v62  ;;  %v410_v18 = vsub.f32 %v1895_v3, %v394_v10  ;;  %v2006_v19 = vsub.f32 0.0, %v469_v15  ;;  %v462_v63 = vsel %vm460_vm13, %v461_v27, %v459_v16 }
 0x138   :  { %v1558_v20 = vpop.eup %1557  ;;  %v2012_v21 = vmax.f32 %v411_v14, 0.0  ;;  %v2014_v0 = vsub.f32 0.0, %v462_v63  ;;  %v480_v22 = vsel %vm479_vm14, %v1907_v12, %v478_v13  ;;  %v471_v23 = vmul.f32 %v1556_v4, %v1912_v17 }
 0x139   :  { %v1560_v24 = vpop.eup %1559  ;;  %v2020_v3 = vmax.f32 %v410_v18, 0.0  ;;  %561 = vst [vmem:[#allocation2 + $0x28] sm:$0xff] %v2006_v19  ;;  %584 = vmax.xlane.f32.xlu1 %v2006_v19  ;;  %v483_v5 = vsel %vm481_vm15, %v482_v51, %v480_v22  ;;  %v475_v25 = vand.u32 2147483648, %v1912_v17  ;;  %v492_v26 = vmul.f32 %v1558_v20, %v1925_v29 }
 0x13a   :  { %1569 = vrsqrt.f32 %v2012_v21  ;;  %582 = vmax.xlane.f32.xlu0 %v2014_v0  ;;  %560 = vst [vmem:[#allocation2 + $0x20] sm:$0xff] %v2014_v0  ;;  %v2031_v27 = vsub.f32 0.0, %v483_v5  ;;  %v473_v28 = vsel %vm472_vm1, %v1912_v17, %v471_v23  ;;  %vm493_vm3 = vcmp.eq.f32.partialorder %v1925_v29, inf }
 0x13b   :  { %1571 = vrsqrt.f32 %v2020_v3  ;;  %v476_v12 = vsel %vm474_vm2, %v475_v25, %v473_v28  ;;  %v494_v30 = vsel %vm493_vm3, %v1925_v29, %v492_v26  ;;  %vm495_vm4 = vcmp.eq.f32.partialorder %v1925_v29, 0.0 }
 0x13c   :  { %v1562_v31 = vpop.eup %1561  ;;  %563 = vst [vmem:[#allocation2 + $0x38] sm:$0xff] %v2031_v27  ;;  %v2043_v32 = vsub.f32 0.0, %v476_v12  ;;  %v496_v33 = vand.u32 2147483648, %v1925_v29  ;;  %v485_v35 = vmul.f32 %v1560_v24, %v1933_v36  ;;  %vm486_vm5 = vcmp.eq.f32.partialorder %v1933_v36, inf }
 0x13d   :  { %v1564_v37 = vpop.eup %1563  ;;  %588 = vmax.xlane.f32.xlu1 %v2031_v27  ;;  %vm488_vm6 = vcmp.eq.f32.partialorder %v1933_v36, 0.0  ;;  %v489_v17 = vand.u32 2147483648, %v1933_v36  ;;  %v506_v40 = vmul.f32 %v1562_v31, %v1953_v47  ;;  %vm507_vm7 = vcmp.eq.f32.partialorder %v1953_v47, inf }
 0x13e   :  { %586 = vmax.xlane.f32.xlu0 %v2043_v32  ;;  %562 = vst [vmem:[#allocation2 + $0x30] sm:$0xff] %v2043_v32  ;;  %v497_v29 = vsel %vm495_vm4, %v496_v33, %v494_v30  ;;  %v487_v34 = vsel %vm486_vm5, %v1933_v36, %v485_v35  ;;  %vm509_vm8 = vcmp.eq.f32.partialorder %v1953_v47, 0.0  ;;  %v510_v42 = vand.u32 2147483648, %v1953_v47 }
 0x13f   :  { %v2058_v43 = vsub.f32 0.0, %v497_v29  ;;  %v490_v38 = vsel %vm488_vm6, %v489_v17, %v487_v34  ;;  %v508_v44 = vsel %vm507_vm7, %v1953_v47, %v506_v40  ;;  %v499_v45 = vmul.f32 %v1564_v37, %v1962_v54 }
 0x140   :  { %v1566_v48 = vpop.eup %1565  ;;  %v2062_v49 = vsub.f32 0.0, %v490_v38  ;;  %v511_v50 = vsel %vm509_vm8, %v510_v42, %v508_v44  ;;  %vm500_vm9 = vcmp.eq.f32.partialorder %v1962_v54, inf  ;;  %v503_v55 = vand.u32 2147483648, %v1962_v54 }
 0x141   :  { %v1568_v51 = vpop.eup %1567  ;;  %565 = vst [vmem:[#allocation2 + $0x48] sm:$0xff] %v2058_v43  ;;  %592 = vmax.xlane.f32.xlu1 %v2058_v43  ;;  %v2067_v36 = vsub.f32 0.0, %v511_v50  ;;  %v501_v53 = vsel %vm500_vm9, %v1962_v54, %v499_v45  ;;  %v520_v47 = vmul.f32 %v1566_v48, %v1981_v8  ;;  %vm502_vm10 = vcmp.eq.f32.partialorder %v1962_v54, 0.0 }
 0x142   :  { %590 = vmax.xlane.f32.xlu0 %v2062_v49  ;;  %564 = vst [vmem:[#allocation2 + $0x40] sm:$0xff] %v2062_v49  ;;  %vm521_vm11 = vcmp.eq.f32.partialorder %v1981_v8, inf  ;;  %v524_v56 = vand.u32 2147483648, %v1981_v8  ;;  %v513_v57 = vmul.f32 %v1568_v51, %v1987_v62  ;;  %v504_v58 = vsel %vm502_vm10, %v503_v55, %v501_v53 }
 0x143   :  { %567 = vst [vmem:[#allocation2 + $0x58] sm:$0xff] %v2067_v36  ;;  %v522_v61 = vsel %vm521_vm11, %v1981_v8, %v520_v47  ;;  %vm523_vm12 = vcmp.eq.f32.partialorder %v1981_v8, 0.0  ;;  %vm514_vm13 = vcmp.eq.f32.partialorder %v1987_v62, inf  ;;  %v2082_v1 = vsub.f32 0.0, %v504_v58 }
 0x144   :  { %v1570_v46 = vpop.eup %1569  ;;  %v525_v6 = vsel %vm523_vm12, %v524_v56, %v522_v61  ;;  %v515_v54 = vsel %vm514_vm13, %v1987_v62, %v513_v57  ;;  %v517_v7 = vand.u32 2147483648, %v1987_v62  ;;  %vm516_vm14 = vcmp.eq.f32.partialorder %v1987_v62, 0.0 }
 0x145   :  { %v1572_v9 = vpop.eup %1571  ;;  %596 = vmax.xlane.f32.xlu1 %v2067_v36  ;;  %v2087_v59 = vsub.f32 0.0, %v525_v6  ;;  %v534_v52 = vmul.f32 %v1570_v46, %v2012_v21  ;;  %vm535_vm15 = vcmp.eq.f32.partialorder %v2012_v21, inf  ;;  %566 = vst [vmem:[#allocation2 + $0x50] sm:$0xff] %v2082_v1  ;;  %vm537_vm1 = vcmp.eq.f32.partialorder %v2012_v21, 0.0 }
 0x146   :  { %594 = vmax.xlane.f32.xlu0 %v2082_v1  ;;  %v518_v8 = vsel %vm516_vm14, %v517_v7, %v515_v54  ;;  %v538_v4 = vand.u32 2147483648, %v2012_v21  ;;  %v527_v10 = vmul.f32 %v1572_v9, %v2020_v3  ;;  %vm528_vm2 = vcmp.eq.f32.partialorder %v2020_v3, inf }
 0x147   :  { %569 = vst [vmem:[#allocation2 + $0x68] sm:$0xff] %v2087_v59  ;;  %v2098_v11 = vsub.f32 0.0, %v518_v8  ;;  %v536_v62 = vsel %vm535_vm15, %v2012_v21, %v534_v52  ;;  %v531_v13 = vand.u32 2147483648, %v2020_v3  ;;  %vm530_vm3 = vcmp.eq.f32.partialorder %v2020_v3, 0.0 }
 0x148   :  { %v539_v14 = vsel %vm537_vm1, %v538_v4, %v536_v62  ;;  %v529_v15 = vsel %vm528_vm2, %v2020_v3, %v527_v10  ;;  %v572_v20 = vlaneseq }
 0x149   :  { %600 = vmax.xlane.f32.xlu1 %v2087_v59  ;;  %568 = vst [vmem:[#allocation2 + $0x60] sm:$0xff] %v2098_v11  ;;  %v2107_v16 = vsub.f32 0.0, %v539_v14  ;;  %v532_v18 = vsel %vm530_vm3, %v531_v13, %v529_v15 }
 0x14a   :  { %598 = vmax.xlane.f32.xlu0 %v2098_v11  ;;  %v2110_v63 = vsub.f32 0.0, %v532_v18  ;;  %v2117_v21 = vand.u32 127, %v572_v20 }
 0x14b   :  { %571 = vst [vmem:[#allocation2 + $0x78] sm:$0xff] %v2107_v16 }
 0x14c   :  { %570 = vst [vmem:[#allocation2 + $0x70] sm:$0xff] %v2110_v63 }
 0x14d   :  { %604 = vmax.xlane.f32.xlu1 %v2107_v16 }
 0x14e   :  { %602 = vmax.xlane.f32.xlu0 %v2110_v63 }
 0x1bc   :  { %v577_v22 = vpop.xlane.xlu1 %576 }
 0x1bd   :  { %vm607_vm4 = vcmp.eq.f32.partialorder %v1935_v39, %v577_v22  ;;  %v575_v23 = vpop.xlane.xlu0 %574 }
 0x1be   :  { %v2121_v24 = vsel %vm607_vm4, %v2117_v21, 128  ;;  %vm606_vm5 = vcmp.eq.f32.partialorder %v1943_v41, %v575_v23 }
 0x1bf   :  { %v2125_v3 = vsel %vm606_vm5, %v2117_v21, 128  ;;  %v653_v5 = vshra.s32 %v2121_v24, 16 }
 0x1c0   :  { %v639_v25 = vshra.s32 %v2125_v3, 16 }
 0x1c1   :  { %v581_v26 = vpop.xlane.xlu1 %580  ;;  %v2129_v28 = vcvt.s32.f32 %v653_v5 }
 0x1c2   :  { %vm609_vm6 = vcmp.eq.f32.partialorder %v1972_v60, %v581_v26  ;;  %v579_v12 = vpop.xlane.xlu0 %578  ;;  %v2132_v39 = vcvt.s32.f32 %v639_v25  ;;  %v638_v25 = vand.u32 65535, %v2125_v3 }
 0x1c3   :  { %v2135_v30 = vsel %vm609_vm6, %v2117_v21, 128  ;;  %vm608_vm7 = vcmp.eq.f32.partialorder %v1978_v2, %v579_v12  ;;  %656 = vmin.xlane.f32.xlu1 %v2129_v28 }
 0x1c4   :  { %v2140_v41 = vsel %vm608_vm7, %v2117_v21, 128  ;;  %642 = vmin.xlane.f32.xlu0 %v2132_v39  ;;  %v681_v31 = vshra.s32 %v2135_v30, 16 }
 0x1c5   :  { %v667_v33 = vshra.s32 %v2140_v41, 16 }
 0x1c6   :  { %v585_v60 = vpop.xlane.xlu1 %584  ;;  %v2145_v35 = vcvt.s32.f32 %v681_v31 }
 0x1c7   :  { %vm611_vm8 = vcmp.eq.f32.partialorder %v2006_v19, %v585_v60  ;;  %v583_v37 = vpop.xlane.xlu0 %582  ;;  %v2148_v17 = vcvt.s32.f32 %v667_v33  ;;  %v640_v33 = vcvt.s32.f32 %v638_v25  ;;  %v680_v60 = vand.u32 65535, %v2135_v30 }
 0x1c8   :  { %v2151_v2 = vsel %vm611_vm8, %v2117_v21, 128  ;;  %vm610_vm9 = vcmp.eq.f32.partialorder %v2014_v0, %v583_v37  ;;  %684 = vmin.xlane.f32.xlu1 %v2145_v35 }
 0x1c9   :  { %v2156_v40 = vsel %vm610_vm9, %v2117_v21, 128  ;;  %670 = vmin.xlane.f32.xlu0 %v2148_v17  ;;  %v709_v29 = vshra.s32 %v2151_v2, 16 }
 0x1ca   :  { %v589_v34 = vpop.xlane.xlu1 %588  ;;  %v695_v19 = vshra.s32 %v2156_v40, 16 }
 0x1cb   :  { %vm613_vm10 = vcmp.eq.f32.partialorder %v2031_v27, %v589_v34  ;;  %v587_v42 = vpop.xlane.xlu0 %586  ;;  %v2162_v38 = vcvt.s32.f32 %v709_v29  ;;  %v666_v29 = vand.u32 65535, %v2140_v41 }
 0x1cc   :  { %v2165_v44 = vsel %vm613_vm10, %v2117_v21, 128  ;;  %vm612_vm11 = vcmp.eq.f32.partialorder %v2043_v32, %v587_v42  ;;  %v2168_v0 = vcvt.s32.f32 %v695_v19  ;;  %v682_v42 = vcvt.s32.f32 %v680_v60 }
 0x1cd   :  { %v2171_v45 = vsel %vm612_vm11, %v2117_v21, 128  ;;  %712 = vmin.xlane.f32.xlu1 %v2162_v38  ;;  %v737_v48 = vshra.s32 %v2165_v44, 16 }
 0x1ce   :  { %v593_v50 = vpop.xlane.xlu1 %592  ;;  %698 = vmin.xlane.f32.xlu0 %v2168_v0  ;;  %v723_v27 = vshra.s32 %v2171_v45, 16 }
 0x1cf   :  { %vm615_vm12 = vcmp.eq.f32.partialorder %v2058_v43, %v593_v50  ;;  %v591_v51 = vpop.xlane.xlu0 %590  ;;  %v2178_v53 = vcvt.s32.f32 %v737_v48  ;;  %v708_v50 = vand.u32 65535, %v2151_v2 }
 0x1d0   :  { %v2181_v32 = vsel %vm615_vm12, %v2117_v21, 128  ;;  %vm614_vm13 = vcmp.eq.f32.partialorder %v2062_v49, %v591_v51  ;;  %v2184_v55 = vcvt.s32.f32 %v723_v27 }
 0x1d1   :  { %v2187_v47 = vsel %vm614_vm13, %v2117_v21, 128  ;;  %740 = vmin.xlane.f32.xlu1 %v2178_v53  ;;  %v765_v56 = vshra.s32 %v2181_v32, 16 }
 0x1d2   :  { %v597_v57 = vpop.xlane.xlu1 %596  ;;  %726 = vmin.xlane.f32.xlu0 %v2184_v55  ;;  %v751_v43 = vshra.s32 %v2187_v47, 16 }
 0x1d3   :  { %vm617_vm14 = vcmp.eq.f32.partialorder %v2067_v36, %v597_v57  ;;  %v595_v58 = vpop.xlane.xlu0 %594  ;;  %v2194_v61 = vcvt.s32.f32 %v765_v56  ;;  %v710_v57 = vcvt.s32.f32 %v708_v50 }
 0x1d4   :  { %v2197_v49 = vsel %vm617_vm14, %v2117_v21, 128  ;;  %vm616_vm15 = vcmp.eq.f32.partialorder %v2082_v1, %v595_v58  ;;  %v2200_v46 = vcvt.s32.f32 %v751_v43  ;;  %v736_v43 = vand.u32 65535, %v2165_v44 }
 0x1d5   :  { %v2203_v6 = vsel %vm616_vm15, %v2117_v21, 128  ;;  %768 = vmin.xlane.f32.xlu1 %v2194_v61  ;;  %v793_v54 = vshra.s32 %v2197_v49, 16 }
 0x1d6   :  { %v601_v7 = vpop.xlane.xlu1 %600  ;;  %754 = vmin.xlane.f32.xlu0 %v2200_v46  ;;  %v779_v36 = vshra.s32 %v2203_v6, 16 }
 0x1d7   :  { %vm619_vm1 = vcmp.eq.f32.partialorder %v2087_v59, %v601_v7  ;;  %v599_v9 = vpop.xlane.xlu0 %598  ;;  %v2210_v52 = vcvt.s32.f32 %v793_v54  ;;  %v722_v54 = vand.u32 65535, %v2171_v45 }
 0x1d8   :  { %v2213_v1 = vsel %vm619_vm1, %v2117_v21, 128  ;;  %vm618_vm2 = vcmp.eq.f32.partialorder %v2098_v11, %v599_v9  ;;  %v2216_v8 = vcvt.s32.f32 %v779_v36  ;;  %v738_v9 = vcvt.s32.f32 %v736_v43 }
 0x1d9   :  { %v2219_v4 = vsel %vm618_vm2, %v2117_v21, 128  ;;  %796 = vmin.xlane.f32.xlu1 %v2210_v52  ;;  %v821_v10 = vshra.s32 %v2213_v1, 16 }
 0x1da   :  { %v605_v62 = vpop.xlane.xlu1 %604  ;;  %782 = vmin.xlane.f32.xlu0 %v2216_v8  ;;  %v807_v59 = vshra.s32 %v2219_v4, 16 }
 0x1db   :  { %vm621_vm3 = vcmp.eq.f32.partialorder %v2107_v16, %v605_v62  ;;  %v603_v13 = vpop.xlane.xlu0 %602  ;;  %v2226_v14 = vcvt.s32.f32 %v821_v10  ;;  %v764_v10 = vand.u32 65535, %v2181_v32 }
 0x1dc   :  { %v2229_v11 = vsel %vm621_vm3, %v2117_v21, 128  ;;  %vm620_vm4 = vcmp.eq.f32.partialorder %v2110_v63, %v603_v13  ;;  %v2232_v15 = vcvt.s32.f32 %v807_v59  ;;  %v652_v63 = vand.u32 65535, %v2121_v24 }
 0x1dd   :  { %v2235_v18 = vsel %vm620_vm4, %v2117_v21, 128  ;;  %824 = vmin.xlane.f32.xlu1 %v2226_v14  ;;  %v849_v22 = vshra.s32 %v2229_v11, 16  ;;  %v750_v59 = vand.u32 65535, %v2187_v47 }
 0x1de   :  { %810 = vmin.xlane.f32.xlu0 %v2232_v15  ;;  %v835_v16 = vshra.s32 %v2235_v18, 16  ;;  %v654_v12 = vcvt.s32.f32 %v652_v63  ;;  %v792_v63 = vand.u32 65535, %v2197_v49 }
 0x1df   :  { %v2241_v23 = vcvt.s32.f32 %v849_v22 }
 0x1e0   :  { %v2243_v5 = vcvt.s32.f32 %v835_v16  ;;  %v766_v16 = vcvt.s32.f32 %v764_v10  ;;  %v866_v10 = vadd.s32 4294967288, %v2117_v21 }
 0x1e1   :  { %852 = vmin.xlane.f32.xlu1 %v2241_v23 }
 0x1e2   :  { %838 = vmin.xlane.f32.xlu0 %v2243_v5 }
 0x250   :  { %v2249_v26 = vpop.xlane.xlu1 %656 }
 0x251   :  { %v2251_v31 = vpop.xlane.xlu0 %642  ;;  %vm658_vm5 = vcmp.eq.f32.partialorder %v2129_v28, %v2249_v26  ;;  %v668_v28 = vcvt.s32.f32 %v666_v29  ;;  %v820_v29 = vand.u32 65535, %v2213_v1 }
 0x252   :  { %v659_v37 = vsel %vm658_vm5, %v654_v12, inf  ;;  %vm644_vm6 = vcmp.eq.f32.partialorder %v2132_v39, %v2251_v31  ;;  %v694_v39 = vand.u32 65535, %v2156_v40  ;;  %v778_v12 = vand.u32 65535, %v2203_v6 }
 0x253   :  { %660 = vmin.xlane.f32.xlu1 %v659_v37  ;;  %v645_v34 = vsel %vm644_vm6, %v640_v33, inf  ;;  %v794_v37 = vcvt.s32.f32 %v792_v63  ;;  %vm871_vm6 = vcmask 130112  }
 0x254   :  { %646 = vmin.xlane.f32.xlu0 %v645_v34 }
 0x255   :  { %v2259_v19 = vpop.xlane.xlu1 %684 }
 0x256   :  { %v2261_v48 = vpop.xlane.xlu0 %670  ;;  %vm686_vm7 = vcmp.eq.f32.partialorder %v2145_v35, %v2259_v19  ;;  %v696_v35 = vcvt.s32.f32 %v694_v39  ;;  %v848_v39 = vand.u32 65535, %v2229_v11 }
 0x257   :  { %v687_v27 = vsel %vm686_vm7, %v682_v42, inf  ;;  %vm672_vm8 = vcmp.eq.f32.partialorder %v2148_v17, %v2261_v48  ;;  %v806_v42 = vand.u32 65535, %v2219_v4 }
 0x258   :  { %688 = vmin.xlane.f32.xlu1 %v687_v27  ;;  %v673_v51 = vsel %vm672_vm8, %v668_v28, inf  ;;  %v822_v27 = vcvt.s32.f32 %v820_v29 }
 0x259   :  { %674 = vmin.xlane.f32.xlu0 %v673_v51 }
 0x25a   :  { %v2269_v56 = vpop.xlane.xlu1 %712 }
 0x25b   :  { %v2272_v58 = vpop.xlane.xlu0 %698  ;;  %vm714_vm9 = vcmp.eq.f32.partialorder %v2162_v38, %v2269_v56  ;;  %v724_v38 = vcvt.s32.f32 %v722_v54  ;;  %v850_v54 = vcvt.s32.f32 %v848_v39 }
 0x25c   :  { %v715_v7 = vsel %vm714_vm9, %v710_v57, inf  ;;  %vm700_vm10 = vcmp.eq.f32.partialorder %v2168_v0, %v2272_v58  ;;  %v834_v57 = vand.u32 65535, %v2235_v18  ;;  %vm878_vm9 = vcmask 195712  }
 0x25d   :  { %716 = vmin.xlane.f32.xlu1 %v715_v7  ;;  %v701_v17 = vsel %vm700_vm10, %v696_v35, inf  ;;  %vm885_vm10 = vcmask 261312  }
 0x25e   :  { %v2279_v36 = vpop.xlane.xlu1 %740  ;;  %702 = vmin.xlane.f32.xlu0 %v701_v17  ;;  %v836_v17 = vcvt.s32.f32 %v834_v57 }
 0x25f   :  { %v2282_v62 = vpop.xlane.xlu0 %726  ;;  %vm742_vm11 = vcmp.eq.f32.partialorder %v2178_v53, %v2279_v36  ;;  %v752_v53 = vcvt.s32.f32 %v750_v59  ;;  %v649_v59 = vcvt.f32.s32 %v2251_v31 }
 0x260   :  { %v743_v13 = vsel %vm742_vm11, %v738_v9, inf  ;;  %vm728_vm12 = vcmp.eq.f32.partialorder %v2184_v55, %v2282_v62  ;;  %v733_v63 = vcvt.f32.s32 %v2282_v62 }
 0x261   :  { %744 = vmin.xlane.f32.xlu1 %v743_v13  ;;  %v729_v0 = vsel %vm728_vm12, %v724_v38, inf  ;;  %v663_v38 = vcvt.f32.s32 %v2249_v26  ;;  %v691_v13 = vcvt.f32.s32 %v2259_v19  ;;  %v650_v26 = vshll.u32 %v649_v59, 16 }
 0x262   :  { %v2289_v22 = vpop.xlane.xlu1 %768  ;;  %730 = vmin.xlane.f32.xlu0 %v729_v0  ;;  %v719_v0 = vcvt.f32.s32 %v2269_v56  ;;  %v1621_v59 = vmov 1.0  }
 0x263   :  { %v2292_v25 = vpop.xlane.xlu0 %754  ;;  %vm770_vm13 = vcmp.eq.f32.partialorder %v2194_v61, %v2289_v22  ;;  %v780_v61 = vcvt.s32.f32 %v778_v12  ;;  %v664_v12 = vshll.u32 %v663_v38, 16 }
 0x264   :  { %v771_v33 = vsel %vm770_vm13, %v766_v16, inf  ;;  %vm756_vm14 = vcmp.eq.f32.partialorder %v2200_v46, %v2292_v25  ;;  %v747_v16 = vcvt.f32.s32 %v2279_v36  ;;  %v761_v31 = vcvt.f32.s32 %v2292_v25 }
 0x265   :  { %772 = vmin.xlane.f32.xlu1 %v771_v33  ;;  %v757_v55 = vsel %vm756_vm14, %v752_v53, inf  ;;  %v692_v33 = vshll.u32 %v691_v13, 16  ;;  %v2344_v36 = vshll.u32 %v733_v63, 16  ;;  %v873_v25 = vadd.s32 4294967280, %v2117_v21 }
 0x266   :  { %v2299_v60 = vpop.xlane.xlu1 %796  ;;  %758 = vmin.xlane.f32.xlu0 %v757_v55  ;;  %vm892_vm13 = vcmask 326912   ;;  %vm899_vm14 = vcmask 392512  }
 0x267   :  { %v2302_v34 = vpop.xlane.xlu0 %782  ;;  %vm798_vm15 = vcmp.eq.f32.partialorder %v2210_v52, %v2299_v60  ;;  %v808_v52 = vcvt.s32.f32 %v806_v42 }
 0x268   :  { %v799_v28 = vsel %vm798_vm15, %v794_v37, inf  ;;  %vm784_vm1 = vcmp.eq.f32.partialorder %v2216_v8, %v2302_v34 }
 0x269   :  { %800 = vmin.xlane.f32.xlu1 %v799_v28  ;;  %v785_v46 = vsel %vm784_vm1, %v780_v61, inf  ;;  %v880_v28 = vadd.s32 4294967272, %v2117_v21 }
 0x26a   :  { %v2309_v50 = vpop.xlane.xlu1 %824  ;;  %786 = vmin.xlane.f32.xlu0 %v785_v46  ;;  %v2352_v46 = vshll.u32 %v761_v31, 16 }
 0x26b   :  { %v2312_v51 = vpop.xlane.xlu0 %810  ;;  %vm826_vm2 = vcmp.eq.f32.partialorder %v2226_v14, %v2309_v50  ;;  %v831_v57 = vcvt.f32.s32 %v2309_v50 }
 0x26c   :  { %v827_v43 = vsel %vm826_vm2, %v822_v27, inf  ;;  %vm812_vm3 = vcmp.eq.f32.partialorder %v2232_v15, %v2312_v51  ;;  %v2328_v15 = vshrl.u32 %v572_v20, 7  ;;  %v775_v20 = vcvt.f32.s32 %v2289_v22 }
 0x26d   :  { %828 = vmin.xlane.f32.xlu1 %v827_v43  ;;  %v813_v8 = vsel %vm812_vm3, %v808_v52, inf  ;;  %v803_v27 = vcvt.f32.s32 %v2299_v60  ;;  %v789_v52 = vcvt.f32.s32 %v2302_v34  ;;  %v887_v60 = vadd.s32 4294967264, %v2117_v21 }
 0x26e   :  { %v2319_v35 = vpop.xlane.xlu1 %852  ;;  %814 = vmin.xlane.f32.xlu0 %v813_v8  ;;  %v869_v53 = vsub.s32 %v866_v10, %v2328_v15  ;;  %v864_v22 = vsub.s32 %v2117_v21, %v2328_v15  ;;  %v2348_v61 = vshll.u32 %v775_v20, 16  ;;  %v876_v10 = vsub.s32 %v873_v25, %v2328_v15 }
 0x26f   :  { %v2321_v7 = vpop.xlane.xlu0 %838  ;;  %vm854_vm4 = vcmp.eq.f32.partialorder %v2241_v23, %v2319_v35  ;;  %v677_v23 = vcvt.f32.s32 %v2261_v48  ;;  %v720_v48 = vshll.u32 %v719_v0, 16  ;;  %v2363_v34 = vshll.u32 %v803_v27, 16 }
 0x270   :  { %v855_v14 = vsel %vm854_vm4, %v850_v54, inf  ;;  %vm840_vm5 = vcmp.eq.f32.partialorder %v2243_v5, %v2321_v7  ;;  %v705_v5 = vcvt.f32.s32 %v2272_v58  ;;  %v2342_v58 = vshll.u32 %v747_v16, 16 }
 0x271   :  { %856 = vmin.xlane.f32.xlu1 %v855_v14  ;;  %v841_v9 = vsel %vm840_vm5, %v836_v17, inf  ;;  %v678_v55 = vshll.u32 %v677_v23, 16  ;;  %v817_v54 = vcvt.f32.s32 %v2312_v51  ;;  %v883_v50 = vsub.s32 %v880_v28, %v2328_v15 }
 0x272   :  { %842 = vmin.xlane.f32.xlu0 %v841_v9  ;;  %v706_v37 = vshll.u32 %v705_v5, 16  ;;  %v2367_v23 = vshll.u32 %v789_v52, 16  ;;  %v894_v5 = vadd.s32 4294967256, %v2117_v21  ;;  %v922_v27 = vadd.s32 4294967224, %v2117_v21 }
 0x273   :  { %v2372_v16 = vshll.u32 %v817_v54, 16  ;;  %vm906_vm2 = vcmask 458112   ;;  %vm913_vm3 = vcmask 523712  }
 0x2e0   :  { %v661_v19 = vpop.xlane.xlu1 %660 }
 0x2e1   :  { %v662_v56 = vcvt.f32.s32 %v661_v19  ;;  %v647_v29 = vpop.xlane.xlu0 %646  ;;  %v901_v19 = vadd.s32 4294967248, %v2117_v21 }
 0x2e2   :  { %v648_v62 = vcvt.f32.s32 %v647_v29 }
 0x2e3   :  { %v665_v42 = vadd.s32 %v664_v12, %v662_v56  ;;  %v890_v12 = vsub.s32 %v887_v60, %v2328_v15  ;;  %v897_v56 = vsub.s32 %v894_v5, %v2328_v15 }
 0x2e4   :  { %v651_v39 = vadd.s32 %v650_v26, %v648_v62  ;;  %v908_v62 = vadd.s32 4294967240, %v2117_v21 }
 0x2e5   :  { %v870_v43 = vrot.slane %v665_v42, %v869_v53  ;;  %v689_v8 = vpop.xlane.xlu1 %688  ;;  %vm973_vm8 = vcmp.eq.s32.totalorder %v2121_v24, %v665_v42  ;;  %v859_v24 = vcvt.f32.s32 %v2319_v35 }
 0x2e6   :  { %v690_v17 = vcvt.f32.s32 %v689_v8  ;;  %v675_v14 = vpop.xlane.xlu0 %674  ;;  %v865_v9 = vrot.slane %v651_v39, %v864_v22  ;;  %vm972_vm7 = vcmp.eq.s32.totalorder %v2125_v3, %v651_v39  ;;  %v2369_v3 = vshll.u32 %v831_v57, 16 }
 0x2e7   :  { %v676_v38 = vcvt.f32.s32 %v675_v14  ;;  %1432 = vmatprep.mubr.msk.f32.mxu1 %vm972_vm7, %v1621_v59  ;;  %v845_v22 = vcvt.f32.s32 %v2321_v7  ;;  %v915_v39 = vadd.s32 4294967232, %v2117_v21  ;;  %v911_v8 = vsub.s32 %v908_v62, %v2328_v15 }
 0x2e8   :  { %v693_v51 = vadd.s32 %v692_v33, %v690_v17  ;;  %v872_v13 = vsel %vm871_vm6, %v870_v43, %v865_v9  ;;  %1433 = vmatmul.mubr.msk.f32.vlgmr.msra.gmra.mrb[0].mxu1 %vm973_vm8, %v1621_v59  ;;  %v925_v9 = vsub.s32 %v922_v27, %v2328_v15  ;;  %vm920_vm6 = vcmask 589312  }
 0x2e9   :  { %v679_v0 = vadd.s32 %v678_v55, %v676_v38  ;;  %vm927_vm7 = vcmask 654912   ;;  %v964_v27 = vadd.s32 4294967176, %v2117_v21 }
 0x2ea   :  { %v717_v63 = vpop.xlane.xlu1 %716  ;;  %v884_v33 = vrot.slane %v693_v51, %v883_v50  ;;  %vm975_vm12 = vcmp.eq.s32.totalorder %v2135_v30, %v693_v51 }
 0x2eb   :  { %v877_v20 = vrot.slane %v679_v0, %v876_v10  ;;  %v718_v53 = vcvt.f32.s32 %v717_v63  ;;  %v703_v26 = vpop.xlane.xlu0 %702  ;;  %vm974_vm11 = vcmp.eq.s32.totalorder %v2140_v41, %v679_v0  ;;  %v967_v7 = vsub.s32 %v964_v27, %v2328_v15 }
 0x2ec   :  { %v704_v31 = vcvt.f32.s32 %v703_v26  ;;  %1435 = vmatprep.mubr.msk.f32.mxu1 %vm974_vm11, %v1621_v59 }
 0x2ed   :  { %v879_v55 = vsel %vm878_vm9, %v877_v20, %v872_v13  ;;  %v721_v29 = vadd.s32 %v720_v48, %v718_v53  ;;  %1436 = vmatmul.mubr.msk.f32.gmra.mrb[2].mxu1 %vm975_vm12, %v1621_v59  ;;  %v904_v48 = vsub.s32 %v901_v19, %v2328_v15  ;;  %v936_v13 = vadd.s32 4294967208, %v2117_v21 }
 0x2ee   :  { %v886_v41 = vsel %vm885_vm10, %v884_v33, %v879_v55  ;;  %v707_v42 = vadd.s32 %v706_v37, %v704_v31  ;;  %v745_v28 = vpop.xlane.xlu1 %744  ;;  %vm934_vm10 = vcmask 720512   ;;  %vm941_vm12 = vcmask 786112  }
 0x2ef   :  { %v746_v25 = vcvt.f32.s32 %v745_v28  ;;  %v731_v30 = vpop.xlane.xlu0 %730  ;;  %v898_v43 = vrot.slane %v721_v29, %v897_v56  ;;  %vm977_vm1 = vcmp.eq.s32.totalorder %v2151_v2, %v721_v29  ;;  %v929_v2 = vadd.s32 4294967216, %v2117_v21 }
 0x2f0   :  { %v891_v52 = vrot.slane %v707_v42, %v890_v12  ;;  %v732_v57 = vcvt.f32.s32 %v731_v30  ;;  %vm976_vm15 = vcmp.eq.s32.totalorder %v2156_v40, %v707_v42  ;;  %v943_v12 = vadd.s32 4294967200, %v2117_v21 }
 0x2f1   :  { %v749_v54 = vadd.s32 %v2342_v58, %v746_v25  ;;  %1438 = vmatprep.mubr.msk.f32.mxu1 %vm976_vm15, %v1621_v59  ;;  %v918_v58 = vsub.s32 %v915_v39, %v2328_v15  ;;  %v957_v28 = vadd.s32 4294967184, %v2117_v21  ;;  %v860_v39 = vshll.u32 %v859_v24, 16 }
 0x2f2   :  { %v893_v37 = vsel %vm892_vm13, %v891_v52, %v886_v41  ;;  %v735_v17 = vadd.s32 %v2344_v36, %v732_v57  ;;  %v773_v14 = vpop.xlane.xlu1 %772  ;;  %1439 = vmatmul.mubr.msk.f32.gmra.mrb[4].mxu1 %vm977_vm1, %v1621_v59  ;;  %v946_v42 = vsub.s32 %v943_v12, %v2328_v15  ;;  %v846_v52 = vshll.u32 %v845_v22, 16 }
 0x2f3   :  { %v900_v40 = vsel %vm899_vm14, %v898_v43, %v893_v37  ;;  %v774_v10 = vcvt.f32.s32 %v773_v14  ;;  %v759_v38 = vpop.xlane.xlu0 %758  ;;  %v912_v51 = vrot.slane %v749_v54, %v911_v8  ;;  %vm979_vm5 = vcmp.eq.s32.totalorder %v2165_v44, %v749_v54 }
 0x2f4   :  { %v905_v60 = vrot.slane %v735_v17, %v904_v48  ;;  %v760_v50 = vcvt.f32.s32 %v759_v38  ;;  %vm978_vm4 = vcmp.eq.s32.totalorder %v2171_v45, %v735_v17  ;;  %v950_v45 = vadd.s32 4294967192, %v2117_v21 }
 0x2f5   :  { %v777_v36 = vadd.s32 %v2348_v61, %v774_v10  ;;  %1441 = vmatprep.mubr.msk.f32.mxu1 %vm978_vm4, %v1621_v59  ;;  %v932_v44 = vsub.s32 %v929_v2, %v2328_v15  ;;  %v960_v43 = vsub.s32 %v957_v28, %v2328_v15  ;;  %vm948_vm14 = vcmask 851712  }
 0x2f6   :  { %v907_v0 = vsel %vm906_vm2, %v905_v60, %v900_v40  ;;  %v763_v5 = vadd.s32 %v2352_v46, %v760_v50  ;;  %v801_v63 = vpop.xlane.xlu1 %800  ;;  %1442 = vmatmul.mubr.msk.f32.gmra.mrb[6].mxu1 %vm979_vm5, %v1621_v59  ;;  %v939_v46 = vsub.s32 %v936_v13, %v2328_v15  ;;  %v953_v29 = vsub.s32 %v950_v45, %v2328_v15 }
 0x2f7   :  { %v914_v20 = vsel %vm913_vm3, %v912_v51, %v907_v0  ;;  %v802_v53 = vcvt.f32.s32 %v801_v63  ;;  %v787_v61 = vpop.xlane.xlu0 %786  ;;  %v926_v31 = vrot.slane %v777_v36, %v925_v9  ;;  %vm981_vm9 = vcmp.eq.s32.totalorder %v2181_v32, %v777_v36 }
 0x2f8   :  { %v919_v26 = vrot.slane %v763_v5, %v918_v58  ;;  %v788_v33 = vcvt.f32.s32 %v787_v61  ;;  %vm980_vm8 = vcmp.eq.s32.totalorder %v2187_v47, %v763_v5  ;;  %vm955_vm1 = vcmask 917312  }
 0x2f9   :  { %v805_v19 = vadd.s32 %v2363_v34, %v802_v53  ;;  %1444 = vmatprep.mubr.msk.f32.mxu1 %vm980_vm8, %v1621_v59  ;;  %vm962_vm3 = vcmask 982912   ;;  %vm969_vm5 = vcmask 1048512  }
 0x2fa   :  { %v921_v55 = vsel %vm920_vm6, %v919_v26, %v914_v20  ;;  %v791_v56 = vadd.s32 %v2367_v23, %v788_v33  ;;  %v829_v62 = vpop.xlane.xlu1 %828  ;;  %1445 = vmatmul.mubr.msk.f32.gmra.mrb[8].mxu1 %vm981_vm9, %v1621_v59 }
 0x2fb   :  { %v928_v47 = vsel %vm927_vm7, %v926_v31, %v921_v55  ;;  %v830_v41 = vcvt.f32.s32 %v829_v62  ;;  %v815_v34 = vpop.xlane.xlu0 %814  ;;  %v940_v30 = vrot.slane %v805_v19, %v939_v46  ;;  %vm983_vm13 = vcmp.eq.s32.totalorder %v2197_v49, %v805_v19 }
 0x2fc   :  { %v933_v25 = vrot.slane %v791_v56, %v932_v44  ;;  %v816_v32 = vcvt.f32.s32 %v815_v34  ;;  %vm982_vm11 = vcmp.eq.s32.totalorder %v2203_v6, %v791_v56 }
 0x2fd   :  { %v833_v23 = vadd.s32 %v2369_v3, %v830_v41  ;;  %1447 = vmatprep.mubr.msk.f32.mxu1 %vm982_vm11, %v1621_v59 }
 0x2fe   :  { %v935_v48 = vsel %vm934_vm10, %v933_v25, %v928_v47  ;;  %v819_v6 = vadd.s32 %v2372_v16, %v816_v32  ;;  %v857_v57 = vpop.xlane.xlu1 %856  ;;  %1448 = vmatmul.mubr.msk.f32.gmra.mrb[10].mxu1 %vm983_vm13, %v1621_v59 }
 0x2ff   :  { %v858_v3 = vcvt.f32.s32 %v857_v57  ;;  %v843_v8 = vpop.xlane.xlu0 %842  ;;  %v942_v21 = vsel %vm941_vm12, %v940_v30, %v935_v48  ;;  %v954_v35 = vrot.slane %v833_v23, %v953_v29  ;;  %vm985_vm2 = vcmp.eq.s32.totalorder %v2213_v1, %v833_v23 }
 0x300   :  { %v947_v49 = vrot.slane %v819_v6, %v946_v42  ;;  %v844_v54 = vcvt.f32.s32 %v843_v8  ;;  %vm984_vm15 = vcmp.eq.s32.totalorder %v2219_v4, %v819_v6 }
 0x301   :  { %v861_v24 = vadd.s32 %v860_v39, %v858_v3  ;;  %1450 = vmatprep.mubr.msk.f32.mxu1 %vm984_vm15, %v1621_v59 }
 0x302   :  { %v847_v16 = vadd.s32 %v846_v52, %v844_v54  ;;  %1451 = vmatmul.mubr.msk.f32.gmra.mrb[12].mxu1 %vm985_vm2, %v1621_v59  ;;  %v949_v22 = vsel %vm948_vm14, %v947_v49, %v942_v21 }
 0x303   :  { %v956_v37 = vsel %vm955_vm1, %v954_v35, %v949_v22  ;;  %v968_v4 = vrot.slane %v861_v24, %v967_v7  ;;  %vm987_vm6 = vcmp.eq.s32.totalorder %v2229_v11, %v861_v24 }
 0x304   :  { %v961_v17 = vrot.slane %v847_v16, %v960_v43  ;;  %vm986_vm4 = vcmp.eq.s32.totalorder %v2235_v18, %v847_v16 }
 0x305   :  { %1453 = vmatprep.mubr.msk.f32.mxu1 %vm986_vm4, %v1621_v59 }
 0x306   :  { %1454 = vmatmul.mubr.msk.f32.gmra.mrb[14].mxu1 %vm987_vm6, %v1621_v59  ;;  %v963_v15 = vsel %vm962_vm3, %v961_v17, %v956_v37 }
 0x307   :  { %v970_v14 = vsel %vm969_vm5, %v968_v4, %v963_v15 }
 0x308   :  { %971 = vst [vmem:[#allocation4] sm:$0x1] %v970_v14 }
 0x309   :  { %1584 = shalt.err (!%p1581_p4)
}
 0x30a   :  { %s1585_s11 = scalar_lea.hbm %s2537_s3, 2048 }
 0x30b   :  { %p1586_p5 = scmp.ne.s32.totalorder %s2537_s3, %s1585_s11  ;;  %p1589_p6 = scmp.lt.u32.totalorder %s1585_s11, %s2537_s3 }
 0x30d   :  { %p1591_p7 = pnand %p1589_p6, %p1586_p5 }
 0x30f   :  { %1594 = shalt.err (!%p1591_p7)
}
 0x310   :  { %s1623_s16 = smov 128   ;;  %s1624_s17 = smov 8  }
 0x311   :  { %1192 = dma.vmem_to_hbm [thread:$0]  %s1187_s7, 2048, %s2537_s3, [#allocation3], %s1623_s16, %s1623_s16, %s1624_s17  }
 0x312   :  { %s1625_s20 = smov [#allocation4]  }
 0x313   :  { %s1199_s21 = sshll.u32 %s1625_s20, 4  ;;  %s1200_s21 = int_to_ptr.vmem [resolvable:$true] %s1199_s21 }
 0x314   :  { %s1595_s22 = scalar_lea.vmem %s1200_s21, 16  ;;  %s1599_s23 = scalar_lea.vmem %s1200_s21, 32 }
 0x315   :  { %p1596_p8 = scmp.ne.s32.totalorder %s1200_s21, %s1595_s22  ;;  %p1600_p9 = scmp.lt.s32.totalorder %s1200_s21, %s1200_s21 }
 0x316   :  { %p1601_p10 = scmp.lt.s32.totalorder %s1599_s23, %s1595_s22 }
 0x318   :  { %p1602_p11 = por %p1601_p10, %p1600_p9 }
 0x31a   :  { %p1603_p12 = pnand %p1602_p11, %p1596_p8 }
 0x31c   :  { %1606 = shalt.err (!%p1603_p12)
}
 0x31d   :  { %s1607_s26 = scalar_lea.hbm %s2538_s4, 16 }
 0x31e   :  { %p1608_p13 = scmp.ne.s32.totalorder %s2538_s4, %s1607_s26  ;;  %p1611_p0 = scmp.lt.u32.totalorder %s1607_s26, %s2538_s4 }
 0x320   :  { %p1613_p1 = pnand %p1611_p0, %p1608_p13 }
 0x322   :  { %1616 = shalt.err (!%p1613_p1)
}
 0x323   :  { %1202 = dma.vmem_to_hbm [thread:$0]  %s1200_s21, 16, %s2538_s4, [#allocation5]  }
 0x3bb   :  { %v1434_v1 = vpop.f32.mrb[0].mxu1 }
 0x3bc   :  { %1166 = vst.msk [vmem:[%s2539_s5 + $0x8] sm:$0xff] %vm68_vm0, %v1434_v1  ;;  %v1086_v11 = vpop.f32.mrb[1].mxu1 }
 0x3bd   :  { %1165 = vst.msk [vmem:[%s2539_s5] sm:$0xff] %vm68_vm0, %v1086_v11 }
 0x3c0   :  { %v1437_v18 = vpop.f32.mrb[2].mxu1 }
 0x3c1   :  { %1168 = vst.msk [vmem:[%s2539_s5 + $0x18] sm:$0xff] %vm68_vm0, %v1437_v18  ;;  %v1096_v59 = vpop.f32.mrb[3].mxu1 }
 0x3c2   :  { %1167 = vst.msk [vmem:[%s2539_s5 + $0x10] sm:$0xff] %vm68_vm0, %v1096_v59 }
 0x3c5   :  { %v1440_v40 = vpop.f32.mrb[4].mxu1 }
 0x3c6   :  { %1170 = vst.msk [vmem:[%s2539_s5 + $0x28] sm:$0xff] %vm68_vm0, %v1440_v40  ;;  %v1106_v9 = vpop.f32.mrb[5].mxu1 }
 0x3c7   :  { %1169 = vst.msk [vmem:[%s2539_s5 + $0x20] sm:$0xff] %vm68_vm0, %v1106_v9 }
 0x3c9   :  { %v1443_v10 = vpop.f32.mrb[6].mxu1 }
 0x3ca   :  { %1172 = vst.msk [vmem:[%s2539_s5 + $0x38] sm:$0xff] %vm68_vm0, %v1443_v10  ;;  %v1116_v58 = vpop.f32.mrb[7].mxu1 }
 0x3cb   :  { %1171 = vst.msk [vmem:[%s2539_s5 + $0x30] sm:$0xff] %vm68_vm0, %v1116_v58 }
 0x3cd   :  { %v1446_v38 = vpop.f32.mrb[8].mxu1 }
 0x3ce   :  { %1174 = vst.msk [vmem:[%s2539_s5 + $0x48] sm:$0xff] %vm68_vm0, %v1446_v38  ;;  %v1126_v60 = vpop.f32.mrb[9].mxu1 }
 0x3cf   :  { %1173 = vst.msk [vmem:[%s2539_s5 + $0x40] sm:$0xff] %vm68_vm0, %v1126_v60 }
 0x3d1   :  { %v1449_v50 = vpop.f32.mrb[10].mxu1 }
 0x3d2   :  { %1176 = vst.msk [vmem:[%s2539_s5 + $0x58] sm:$0xff] %vm68_vm0, %v1449_v50  ;;  %v1136_v2 = vpop.f32.mrb[11].mxu1 }
 0x3d3   :  { %1175 = vst.msk [vmem:[%s2539_s5 + $0x50] sm:$0xff] %vm68_vm0, %v1136_v2 }
 0x3d5   :  { %v1452_v51 = vpop.f32.mrb[12].mxu1 }
 0x3d6   :  { %1178 = vst.msk [vmem:[%s2539_s5 + $0x68] sm:$0xff] %vm68_vm0, %v1452_v51  ;;  %v1146_v36 = vpop.f32.mrb[13].mxu1 }
 0x3d7   :  { %1177 = vst.msk [vmem:[%s2539_s5 + $0x60] sm:$0xff] %vm68_vm0, %v1146_v36 }
 0x3d9   :  { %v1455_v13 = vpop.f32.mrb[14].mxu1 }
 0x3da   :  { %1180 = vst.msk [vmem:[%s2539_s5 + $0x78] sm:$0xff] %vm68_vm0, %v1455_v13  ;;  %v1156_v0 = vpop.f32.mrb[15].mxu1 }
 0x3db   :  { %1179 = vst.msk [vmem:[%s2539_s5 + $0x70] sm:$0xff] %vm68_vm0, %v1156_v0 }
 0x3dc   :  { %1617 = dma.done.wait [#allocation3], 2048  }
 0x3dd   :  { %1618 = vsyncadd [#allocation3], 4294965248 }
 0x3de   :  { %1619 = dma.done.wait [#allocation5], 16  }
 0x3df   :  { %1620 = vsyncadd [#allocation5], 4294967280 }
 0x3e0   :  { %1213 = vsyncpa [#allocation3], 1 }
 0x3e1   :  { %1214 = vsyncpa [#allocation5], 1 }

</bundles_post_ra>
